<compile_context>
chip_gen: v7x
topology: tpu7x:2x2x1
jax: 0.10.0
libtpu: 0.0.40
codegen_flags: <defaults>
</compile_context>

<pallas_src>
import functools

import jax
import jax.numpy as jnp
from jax.experimental import pallas as pl
from jax.experimental.pallas import tpu as pltpu

M = 1.0  # module default self.M = 1
_TINY_FAST_PATH_ELEMS = 32768  # below this, a fused XLA expression beats pallas_call


def _list_one_loss_kernel(yp_ref, yt_ref, col_ref, *, inv_m):
    # Blocks are (N, TILE_D): full softmax axis resident, columns on the lane axis.
    yp = yp_ref[...].astype(jnp.float32)
    yt = yt_ref[...].astype(jnp.float32)
    if inv_m != 1.0:  # static Python branch: skip two full-block VPU muls when M == 1
        yp = yp * inv_m
        yts = yt * (-inv_m)
    else:
        yts = -yt

    # ---- pred side: log(softmax(yp, axis=0) + 1e-9), divide-free & exact ----
    yp_max = jnp.max(yp, axis=0, keepdims=True)
    ep = jnp.exp(yp - yp_max)
    sum_ep = jnp.sum(ep, axis=0, keepdims=True)            # (1, TILE_D)
    log_sum_ep = jnp.log(sum_ep)                            # (1, TILE_D)
    # Exact match to the torch reference (epsilon kept inside the log).
    pred_log = jnp.log(ep + 1e-9 * sum_ep)                  # (N, TILE_D)

    # ---- true side: softmax(-yt, axis=0) kept unnormalized ----
    yt_max = jnp.max(yts, axis=0, keepdims=True)
    et = jnp.exp(yts - yt_max)
    sum_et = jnp.sum(et, axis=0, keepdims=True)             # (1, TILE_D)

    # per-column loss:
    #   -sum_n softmax_t[n] * (pred_log[n] - log_sum_ep)
    # = log_sum_ep - sum_n(et[n] * pred_log[n]) / sum_et
    # (sublane reduce rides the XLU slot; do NOT convert to a skinny MXU dot)
    weighted = jnp.sum(et * pred_log, axis=0, keepdims=True)
    col_ref[...] = log_sum_ep - weighted * pl.reciprocal(sum_et)  # one recip per column


def _list_one_loss_jax(y_pred, y_true, inv_m):
    # Fast path for tiny inputs: fused XLA elementwise + reduce.
    yp = y_pred.astype(jnp.float32) * inv_m
    yt = y_true.astype(jnp.float32) * (-inv_m)
    pred_max = jax.nn.softmax(yp, axis=0) + 1e-9
    true_max = jax.nn.softmax(yt, axis=0)
    return -jnp.sum(true_max * jnp.log(pred_max))


def _vmem_cap_bytes() -> int:
    """Generation-aware VMEM cap (~75% of physical: ~48 MiB v7x, ~96 MiB v5e/v6e)."""
    try:
        phys = int(pltpu.get_tpu_info().vmem_capacity_bytes)
    except Exception:
        phys = 64 << 20  # conservative (v7x per-TC) fallback
    return max(int(phys * 3 // 4), 16 << 20)


def _choose_tile(n: int, d: int, itemsize: int, vmem_cap: int) -> tuple[int, int]:
    """Pick (tile_d, num_tiles). Big lane tiles; >=2 tiles when d >= 256 (v7x megacore)."""
    if d < 256:
        return d, 1  # full-extent block along D (always a legal block shape)
    # Per-column VMEM cost: 2 inputs x 2 pipeline buffers x n x itemsize,
    # plus headroom for the f32 in-kernel temporaries (yp, yt, ep, et, pred_log, ...)
    # and the double-buffered (1, td) f32 output.
    bytes_per_col = 2 * 2 * n * itemsize + 6 * n * 4 + 2 * 4
    budget = int(vmem_cap * 3 // 4)
    td = budget // max(bytes_per_col, 1)
    td = max(512, min((td // 128) * 128, 8192))
    # Guarantee >= 2 grid tiles so the "parallel" axis can shard across 2 TCs on v7x.
    half = ((pl.cdiv(d, 2) + 127) // 128) * 128
    td = min(td, half)
    return td, pl.cdiv(d, td)


def list_one_loss(y_pred: jax.Array, y_true: jax.Array, *, m: float = M,
                  min_pallas_elems: int = _TINY_FAST_PATH_ELEMS) -> jax.Array:
    assert y_pred.shape == y_true.shape and y_pred.ndim == 2
    n, d = y_pred.shape
    inv_m = 1.0 / float(m)

    if n * d < min_pallas_elems:
        # Launch + separate wrapper-reduce dominate for tiny inputs; stay in XLA.
        return _list_one_loss_jax(y_pred, y_true, inv_m)

    vmem_cap = _vmem_cap_bytes()
    itemsize = max(y_pred.dtype.itemsize, y_true.dtype.itemsize)
    td, num_tiles = _choose_tile(n, d, itemsize, vmem_cap)

    # VMEM budget: inputs (double-buffered) + output (double-buffered) + headroom for
    # the f32 intermediates the kernel materializes, capped per chip generation.
    in_bytes = 2 * 2 * n * td * itemsize
    out_bytes = 2 * td * 4
    scratch_headroom = 6 * n * td * 4
    vmem_limit = int(min(max(in_bytes + out_bytes + scratch_headroom + (4 << 20),
                             16 << 20), vmem_cap))

    kernel = functools.partial(_list_one_loss_kernel, inv_m=inv_m)

    col_loss = pl.pallas_call(
        kernel,
        grid=(num_tiles,),
        in_specs=[
            pl.BlockSpec((n, td), lambda j: (0, j)),
            pl.BlockSpec((n, td), lambda j: (0, j)),
        ],
        # No wrapper padding: the last block may be partial; Pallas clips the DMA.
        # Any garbage in the tail columns stays per-column-local inside the kernel
        # and is never written past d in the (1, d) output.
        out_specs=pl.BlockSpec((1, td), lambda j: (0, j)),
        out_shape=jax.ShapeDtypeStruct((1, d), jnp.float32),
        compiler_params=pltpu.CompilerParams(
            dimension_semantics=("parallel",),
            vmem_limit_bytes=vmem_limit,
        ),
    )(y_pred, y_true)

    # Finish the scalar reduction in JAX (mean of a 0-d tensor is identity).
    return jnp.sum(col_loss)


def _reference(y_pred, y_true, m: float = M):
    pred_max = jax.nn.softmax(y_pred / m, axis=0) + 1e-9
    true_max = jax.nn.softmax(-y_true / m, axis=0)
    return -jnp.sum(true_max * jnp.log(pred_max))


if __name__ == "__main__":
    key = jax.random.PRNGKey(0)
    k1, k2, k3, k4, k5, k6 = jax.random.split(key, 6)

    # Case 1: tiny shape matching the module's typical use (list length N=8, D=32).
    # Goes through the fused-XLA fast path.
    yp_small = jax.random.normal(k1, (8, 32), dtype=jnp.float32)
    yt_small = jax.random.normal(k2, (8, 32), dtype=jnp.float32)
    loss_small = jax.block_until_ready(list_one_loss(yp_small, yt_small))
    ref_small = jax.block_until_ready(_reference(yp_small, yt_small))
    assert jnp.allclose(loss_small, ref_small, rtol=1e-5, atol=1e-5), (loss_small, ref_small)

    # Case 2: Pallas path, single full-extent block (d < 256), forced past the fast path.
    yp_mid = jax.random.normal(k3, (8, 160), dtype=jnp.float32)
    yt_mid = jax.random.normal(k4, (8, 160), dtype=jnp.float32)
    loss_mid = jax.block_until_ready(list_one_loss(yp_mid, yt_mid, min_pallas_elems=0))
    ref_mid = jax.block_until_ready(_reference(yp_mid, yt_mid))
    assert jnp.allclose(loss_mid, ref_mid, rtol=1e-5, atol=1e-5), (loss_mid, ref_mid)

    # Case 3: Pallas path, multi-tile grid with a ragged (partial) last block, no padding.
    yp_big = jax.random.normal(k5, (16, 2180), dtype=jnp.float32)
    yt_big = jax.random.normal(k6, (16, 2180), dtype=jnp.float32)
    loss_big = jax.block_until_ready(list_one_loss(yp_big, yt_big))
    ref_big = jax.block_until_ready(_reference(yp_big, yt_big))
    assert jnp.allclose(loss_big, ref_big, rtol=1e-5, atol=1e-5), (loss_big, ref_big)

    print("KERNEL_OK")
</pallas_src>

<mosaic_0001>
module attributes {stable_mosaic.version = 11 : i64} {
  func.func @_list_one_loss_kernel(%arg0: i32, %arg1: memref<8x160xf32, #tpu.memory_space<vmem>>, %arg2: memref<8x160xf32, #tpu.memory_space<vmem>>, %arg3: memref<1x160xf32, #tpu.memory_space<vmem>>) attributes {dimension_semantics = [#tpu.dimension_semantics<parallel>], iteration_bounds = array<i64: 1>, scalar_prefetch = 0 : i64, scratch_operands = 0 : i64, tpu.core_type = #tpu.core_type<tc>, window_params = [{transform_indices = @transform_0, window_bounds = array<i64: 8, 160>}, {transform_indices = @transform_1, window_bounds = array<i64: 8, 160>}, {transform_indices = @transform_2, window_bounds = array<i64: 1, 160>}]} {
    %c0 = arith.constant 0 : index
    %c0_0 = arith.constant 0 : index
    %0 = vector.load %arg1[%c0, %c0_0] : memref<8x160xf32, #tpu.memory_space<vmem>>, vector<8x160xf32>
    %c0_1 = arith.constant 0 : index
    %c0_2 = arith.constant 0 : index
    %1 = vector.load %arg2[%c0_1, %c0_2] : memref<8x160xf32, #tpu.memory_space<vmem>>, vector<8x160xf32>
    %cst = arith.constant 0.000000e+00 : f32
    %2 = vector.broadcast %cst : f32 to vector<8x160xf32>
    %3 = arith.subf %2, %1 : vector<8x160xf32>
    %cst_3 = arith.constant dense<0xFF800000> : vector<160xf32>
    %4 = vector.multi_reduction <maximumf>, %0, %cst_3 [0] : vector<8x160xf32> to vector<160xf32>
    %5 = vector.shape_cast %4 : vector<160xf32> to vector<1x160xf32>
    %6 = vector.broadcast %5 : vector<1x160xf32> to vector<8x160xf32>
    %7 = arith.subf %0, %6 : vector<8x160xf32>
    %8 = math.exp %7 : vector<8x160xf32>
    %cst_4 = arith.constant dense<0.000000e+00> : vector<160xf32>
    %9 = vector.multi_reduction <add>, %8, %cst_4 [0] : vector<8x160xf32> to vector<160xf32>
    %10 = vector.shape_cast %9 : vector<160xf32> to vector<1x160xf32>
    %11 = math.log %10 : vector<1x160xf32>
    %cst_5 = arith.constant 9.99999971E-10 : f32
    %12 = vector.broadcast %cst_5 : f32 to vector<1x160xf32>
    %13 = arith.mulf %12, %10 : vector<1x160xf32>
    %14 = vector.broadcast %13 : vector<1x160xf32> to vector<8x160xf32>
    %15 = arith.addf %8, %14 : vector<8x160xf32>
    %16 = math.log %15 : vector<8x160xf32>
    %cst_6 = arith.constant dense<0xFF800000> : vector<160xf32>
    %17 = vector.multi_reduction <maximumf>, %3, %cst_6 [0] : vector<8x160xf32> to vector<160xf32>
    %18 = vector.shape_cast %17 : vector<160xf32> to vector<1x160xf32>
    %19 = vector.broadcast %18 : vector<1x160xf32> to vector<8x160xf32>
    %20 = arith.subf %3, %19 : vector<8x160xf32>
    %21 = math.exp %20 : vector<8x160xf32>
    %cst_7 = arith.constant dense<0.000000e+00> : vector<160xf32>
    %22 = vector.multi_reduction <add>, %21, %cst_7 [0] : vector<8x160xf32> to vector<160xf32>
    %23 = vector.shape_cast %22 : vector<160xf32> to vector<1x160xf32>
    %24 = arith.mulf %21, %16 : vector<8x160xf32>
    %cst_8 = arith.constant dense<0.000000e+00> : vector<160xf32>
    %25 = vector.multi_reduction <add>, %24, %cst_8 [0] : vector<8x160xf32> to vector<160xf32>
    %26 = vector.shape_cast %25 : vector<160xf32> to vector<1x160xf32>
    %27 = tpu.reciprocal %23 : vector<1x160xf32> -> vector<1x160xf32>
    %28 = arith.mulf %26, %27 : vector<1x160xf32>
    %29 = arith.subf %11, %28 : vector<1x160xf32>
    %c0_9 = arith.constant 0 : index
    %c0_10 = arith.constant 0 : index
    %30 = vector.load %arg3[%c0_9, %c0_10] : memref<1x160xf32, #tpu.memory_space<vmem>>, vector<1x160xf32>
    tpu.vector_store %arg3[%c0_9, %c0_10], %29 {strides = array<i32>} : memref<1x160xf32, #tpu.memory_space<vmem>>, vector<1x160xf32>,
    return
  }
  func.func @transform_0(%arg0: i32) -> (i32, i32) {
    %c0_i32 = arith.constant 0 : i32
    %c0_i32_0 = arith.constant 0 : i32
    return %c0_i32, %arg0 : i32, i32
  }
  func.func @transform_1(%arg0: i32) -> (i32, i32) {
    %c0_i32 = arith.constant 0 : i32
    %c0_i32_0 = arith.constant 0 : i32
    return %c0_i32, %arg0 : i32, i32
  }
  func.func @transform_2(%arg0: i32) -> (i32, i32) {
    %c0_i32 = arith.constant 0 : i32
    %c0_i32_0 = arith.constant 0 : i32
    return %c0_i32, %arg0 : i32, i32
  }
}

</mosaic_0001>

<bundles_post_ra>
// kernel: tpu_custom_call.1
= control target key start
LH: loop header
LB: loop body
LE: loop exit
PB: predicated region body
PF: predicated region fallthrough
CT: control target
= control target key end

     0   :  { %7 = vsyncpa [#allocation3], 0  ;;  %s335_s0 = inlined_call_operand.hbm [shape: f32[8,160], index: 0, kind: input, shape index: {}]   ;;  %s336_s1 = inlined_call_operand.hbm [shape: f32[8,160], index: 1, kind: input, shape index: {}]   ;;  %s337_s2 = inlined_call_operand.hbm [shape: f32[1,160], index: 2, kind: output, shape index: {}]  }
   0x1   :  { %8 = vsyncpa [#allocation6], 0 }
   0x2   :  { %9 = vsyncpa [#allocation4], 0  ;;  %s275_s9 = smov [#allocation2]   ;;  %s276_s11 = smov [#allocation5]  }
   0x3   :  { %s16_s10 = sshll.u32 %s275_s9, 4  ;;  %s26_s12 = sshll.u32 %s276_s11, 4  ;;  %s17_s10 = int_to_ptr.vmem [resolvable:$true] %s16_s10  ;;  %s27_s12 = int_to_ptr.vmem [resolvable:$true] %s26_s12 }
   0x4   :  { %s203_s15 = scalar_lea.hbm %s335_s0, 256 }
   0x5   :  { %p204_p0 = scmp.ne.s32.totalorder %s335_s0, %s203_s15  ;;  %p207_p1 = scmp.lt.u32.totalorder %s203_s15, %s335_s0 }
   0x7   :  { %p209_p2 = pnand %p207_p1, %p204_p0 }
   0x9   :  { %212 = shalt.err (!%p209_p2)
}
   0xa   :  { %s213_s20 = scalar_lea.vmem %s17_s10, 256  ;;  %p218_p4 = scmp.lt.s32.totalorder %s17_s10, %s17_s10 }
   0xb   :  { %p214_p3 = scmp.ne.s32.totalorder %s17_s10, %s213_s20  ;;  %p219_p5 = scmp.lt.s32.totalorder %s213_s20, %s213_s20 }
   0xd   :  { %p220_p6 = por %p219_p5, %p218_p4 }
   0xf   :  { %p221_p7 = pnand %p220_p6, %p214_p3 }
  0x11   :  { %224 = shalt.err (!%p221_p7)
}
  0x12   :  { %19 = dma.hbm_to_vmem [thread:$0]  %s335_s0, 256, %s17_s10, [#allocation3]  }
  0x13   :  { %s225_s25 = scalar_lea.hbm %s336_s1, 256 }
  0x14   :  { %p226_p8 = scmp.ne.s32.totalorder %s336_s1, %s225_s25  ;;  %p229_p9 = scmp.lt.u32.totalorder %s225_s25, %s336_s1 }
  0x16   :  { %p231_p10 = pnand %p229_p9, %p226_p8 }
  0x18   :  { %234 = shalt.err (!%p231_p10)
}
  0x19   :  { %s235_s30 = scalar_lea.vmem %s27_s12, 256  ;;  %p240_p12 = scmp.lt.s32.totalorder %s27_s12, %s27_s12 }
  0x1a   :  { %p236_p11 = scmp.ne.s32.totalorder %s27_s12, %s235_s30  ;;  %p241_p13 = scmp.lt.s32.totalorder %s235_s30, %s235_s30 }
  0x1c   :  { %p242_p0 = por %p241_p13, %p240_p12 }
  0x1e   :  { %p243_p1 = pnand %p242_p0, %p236_p11 }
  0x20   :  { %246 = shalt.err (!%p243_p1)
}
  0x21   :  { %29 = dma.hbm_to_vmem [thread:$0]  %s336_s1, 256, %s27_s12, [#allocation6]  }
  0x22   :  { %269 = dma.done.wait [#allocation3], 256  }
  0x23   :  { %270 = vsyncadd [#allocation3], 4294967040 }
  0x24   :  { %271 = dma.done.wait [#allocation6], 256  }
  0x25   :  { %272 = vsyncadd [#allocation6], 4294967040  ;;  %vm48_vm0 = vcmask 261120   ;;  %v36_v0 = vld [vmem:[#allocation2] sm:$0xff]  ;;  %v37_v1 = vld [vmem:[#allocation2 + $0x8] sm:$0xff]  ;;  %s278_s1 = smov [#allocation7]  }
  0x26   :  { %v38_v2 = vld [vmem:[#allocation5] sm:$0xff]  ;;  %v39_v3 = vld [vmem:[#allocation5 + $0x8] sm:$0xff]  ;;  %v42_v5 = vrot.slane %v36_v0, 4  ;;  %v49_v6 = vsel %vm48_vm0, %v37_v1, -inf  ;;  %s169_s4 = sshll.u32 %s278_s1, 4  ;;  %s170_s4 = int_to_ptr.vmem [resolvable:$true] %s169_s4 }
  0x27   :  { %v40_v4 = vsub.f32 0.0, %v38_v2  ;;  %v41_v7 = vsub.f32 0.0, %v39_v3  ;;  %v50_v8 = vrot.slane %v49_v6, 4  ;;  %s247_s5 = scalar_lea.vmem %s170_s4, 32  ;;  %p252_p3 = scmp.lt.s32.totalorder %s170_s4, %s170_s4 }
  0x28   :  { %v43_v9 = vmax.f32 %v36_v0, %v42_v5  ;;  %p248_p2 = scmp.ne.s32.totalorder %s170_s4, %s247_s5  ;;  %p253_p4 = scmp.lt.s32.totalorder %s247_s5, %s247_s5 }
  0x29   :  { %v87_v10 = vrot.slane %v40_v4, 4  ;;  %v51_v11 = vmax.f32 %v49_v6, %v50_v8  ;;  %v93_v12 = vsel %vm48_vm0, %v41_v7, -inf }
  0x2a   :  { %v44_v13 = vrot.slane %v43_v9, 2  ;;  %v94_v15 = vrot.slane %v93_v12, 4  ;;  %p254_p5 = por %p253_p4, %p252_p3 }
  0x2b   :  { %v88_v14 = vmax.f32 %v40_v4, %v87_v10  ;;  %v52_v16 = vrot.slane %v51_v11, 2 }
  0x2c   :  { %v45_v17 = vmax.f32 %v43_v9, %v44_v13  ;;  %v95_v19 = vmax.f32 %v93_v12, %v94_v15  ;;  %p255_p6 = pnand %p254_p5, %p248_p2 }
  0x2d   :  { %v89_v18 = vrot.slane %v88_v14, 2  ;;  %v53_v20 = vmax.f32 %v51_v11, %v52_v16 }
  0x2e   :  { %v46_v21 = vrot.slane %v45_v17, 1  ;;  %v96_v23 = vrot.slane %v95_v19, 2 }
  0x2f   :  { %v90_v22 = vmax.f32 %v88_v14, %v89_v18  ;;  %v54_v24 = vrot.slane %v53_v20, 1 }
  0x30   :  { %v47_v25 = vmax.f32 %v45_v17, %v46_v21  ;;  %v97_v27 = vmax.f32 %v95_v19, %v96_v23 }
  0x31   :  { %v91_v26 = vrot.slane %v90_v22, 1  ;;  %v55_v28 = vmax.f32 %v53_v20, %v54_v24 }
  0x32   :  { %v56_v29 = vsub.f32 %v36_v0, %v47_v25  ;;  %v98_v31 = vrot.slane %v97_v27, 1 }
  0x33   :  { %v92_v30 = vmax.f32 %v90_v22, %v91_v26  ;;  %v57_v32 = vsub.f32 %v37_v1, %v55_v28  ;;  %v277_v28 = vmov 1966171168  }
  0x34   :  { %v58_v33 = vmul.f32 1.442695, %v56_v29  ;;  %v99_v34 = vmax.f32 %v97_v27, %v98_v31  ;;  %v144_v29 = vunpack.c.l.s4 %v277_v28 }
  0x35   :  { %v100_v35 = vsub.f32 %v40_v4, %v92_v30  ;;  %v60_v36 = vmul.f32 1.442695, %v57_v32  ;;  %v146_v30 = vlaneseq }
  0x36   :  { %183 = vpow2.f32 %v58_v33  ;;  %v101_v37 = vsub.f32 %v41_v7, %v99_v34 }
  0x37   :  { %v102_v38 = vmul.f32 1.442695, %v100_v35  ;;  %185 = vpow2.f32 %v60_v36  ;;  %vm160_vm1 = vcmp.lt.s32.totalorder %v146_v30, 160 }
  0x38   :  { %v104_v39 = vmul.f32 1.442695, %v101_v37 }
  0x39   :  { %187 = vpow2.f32 %v102_v38 }
  0x3a   :  { %189 = vpow2.f32 %v104_v39  ;;  %v145_v39 = vunpack.c.0.s8 %v144_v29 }
  0x40   :  { %v184_v40 = vpop.eup %183 }
  0x41   :  { %v186_v41 = vpop.eup %185  ;;  %v62_v42 = vrot.slane %v184_v40, 4 }
  0x42   :  { %v68_v43 = vsel %vm48_vm0, %v186_v41, 0.0 }
  0x43   :  { %v188_v44 = vpop.eup %187  ;;  %v63_v45 = vadd.f32 %v184_v40, %v62_v42  ;;  %v69_v46 = vrot.slane %v68_v43, 4 }
  0x44   :  { %v190_v47 = vpop.eup %189  ;;  %v106_v52 = vrot.slane %v188_v44, 4 }
  0x45   :  { %v64_v48 = vrot.slane %v63_v45, 2  ;;  %v70_v49 = vadd.f32 %v69_v46, %v68_v43  ;;  %v112_v53 = vsel %vm48_vm0, %v190_v47, 0.0 }
  0x46   :  { %v113_v56 = vrot.slane %v112_v53, 4  ;;  %v107_v59 = vadd.f32 %v188_v44, %v106_v52 }
  0x47   :  { %v65_v50 = vadd.f32 %v64_v48, %v63_v45  ;;  %v71_v51 = vrot.slane %v70_v49, 2 }
  0x48   :  { %v114_v62 = vadd.f32 %v113_v56, %v112_v53  ;;  %v108_v1 = vrot.slane %v107_v59, 2 }
  0x49   :  { %v66_v54 = vrot.slane %v65_v50, 1  ;;  %v72_v55 = vadd.f32 %v71_v51, %v70_v49 }
  0x4a   :  { %v115_v3 = vrot.slane %v114_v62, 2  ;;  %v109_v4 = vadd.f32 %v108_v1, %v107_v59 }
  0x4b   :  { %v67_v57 = vadd.f32 %v66_v54, %v65_v50  ;;  %v73_v58 = vrot.slane %v72_v55, 1 }
  0x4c   :  { %v116_v5 = vadd.f32 %v115_v3, %v114_v62  ;;  %v110_v6 = vrot.slane %v109_v4, 1 }
  0x4d   :  { %v74_v60 = vadd.f32 %v73_v58, %v72_v55  ;;  %v79_v61 = vmul.f32 1e-09, %v67_v57 }
  0x4e   :  { %v117_v7 = vrot.slane %v116_v5, 1  ;;  %v111_v9 = vadd.f32 %v110_v6, %v109_v4 }
  0x4f   :  { %v80_v63 = vmul.f32 1e-09, %v74_v60  ;;  %v81_v0 = vadd.f32 %v184_v40, %v79_v61  ;;  %v147_v40 = vshrl.u32 %v146_v30, 7 }
  0x50   :  { %v118_v13 = vadd.f32 %v117_v7, %v116_v5 }
  0x51   :  { %v82_v2 = vadd.f32 %v186_v41, %v80_v63  ;;  %191 = vlog2.f32 %v81_v0 }
  0x53   :  { %193 = vlog2.f32 %v82_v2 }
  0x54   :  { %195 = vlog2.f32 %v67_v57 }
  0x55   :  { %197 = vrcp.f32 %v111_v9 }
  0x56   :  { %199 = vlog2.f32 %v74_v60 }
  0x57   :  { %201 = vrcp.f32 %v118_v13 }
  0x5b   :  { %v192_v8 = vpop.eup %191 }
  0x5c   :  { %v84_v10 = vmul.f32 0.6931472, %v192_v8 }
  0x5d   :  { %v194_v11 = vpop.eup %193 }
  0x5e   :  { %v86_v12 = vmul.f32 0.6931472, %v194_v11  ;;  %v119_v14 = vmul.f32 %v188_v44, %v84_v10  ;;  %v196_v24 = vpop.eup %195  ;;  %v148_v44 = vsub.s32 %v145_v39, %v147_v40 }
  0x5f   :  { %v198_v26 = vpop.eup %197  ;;  %v76_v33 = vmul.f32 0.6931472, %v196_v24 }
  0x60   :  { %v120_v15 = vmul.f32 %v190_v47, %v86_v12  ;;  %v121_v16 = vrot.slane %v119_v14, 4  ;;  %v200_v31 = vpop.eup %199 }
  0x61   :  { %v202_v35 = vpop.eup %201  ;;  %v78_v37 = vmul.f32 0.6931472, %v200_v31 }
  0x62   :  { %v122_v17 = vadd.f32 %v121_v16, %v119_v14  ;;  %v127_v18 = vsel %vm48_vm0, %v120_v15, 0.0 }
  0x63   :  { %v128_v19 = vrot.slane %v127_v18, 4 }
  0x64   :  { %v123_v20 = vrot.slane %v122_v17, 2 }
  0x65   :  { %v129_v21 = vadd.f32 %v128_v19, %v127_v18 }
  0x66   :  { %v124_v22 = vadd.f32 %v123_v20, %v122_v17 }
  0x67   :  { %v130_v23 = vrot.slane %v129_v21, 2 }
  0x68   :  { %v125_v25 = vrot.slane %v124_v22, 1 }
  0x69   :  { %v131_v27 = vadd.f32 %v130_v23, %v129_v21 }
  0x6a   :  { %v126_v32 = vadd.f32 %v125_v25, %v124_v22 }
  0x6b   :  { %v132_v34 = vrot.slane %v131_v27, 1 }
  0x6c   :  { %v136_v36 = vmul.f32 %v198_v26, %v126_v32 }
  0x6d   :  { %v133_v38 = vadd.f32 %v132_v34, %v131_v27 }
  0x6e   :  { %v138_v42 = vsub.f32 %v76_v33, %v136_v36 }
  0x6f   :  { %v137_v41 = vmul.f32 %v202_v35, %v133_v38 }
  0x71   :  { %v139_v43 = vsub.f32 %v78_v37, %v137_v41 }
  0x73   :  { %v142_v45 = vcombine.low %v138_v42, %v139_v43 }
  0x75   :  { %v149_v46 = vrot.slane %v142_v45, %v148_v44 }
  0x77   :  { %v156_v47 = vrot.slane %v149_v46, %v148_v44 }
  0x79   :  { %162 = vst.msk [vmem:[#allocation7] sm:$0x3] %vm160_vm1, %v156_v47 }
  0x7a   :  { %258 = shalt.err (!%p255_p6)
}
  0x7b   :  { %s259_s8 = scalar_lea.hbm %s337_s2, 32 }
  0x7c   :  { %p260_p7 = scmp.ne.s32.totalorder %s337_s2, %s259_s8  ;;  %p263_p8 = scmp.lt.u32.totalorder %s259_s8, %s337_s2 }
  0x7e   :  { %p265_p9 = pnand %p263_p8, %p260_p7 }
  0x80   :  { %268 = shalt.err (!%p265_p9)
}
  0x81   :  { %172 = dma.vmem_to_hbm [thread:$0]  %s170_s4, 32, %s337_s2, [#allocation4]  }
  0x82   :  { %273 = dma.done.wait [#allocation4], 32  }
  0x83   :  { %274 = vsyncadd [#allocation4], 4294967264 }
  0x84   :  { %176 = vsyncpa [#allocation3], 1 }
  0x85   :  { %177 = vsyncpa [#allocation6], 1 }
  0x86   :  { %178 = vsyncpa [#allocation4], 1 }

</bundles_post_ra>
